<compile_context>
chip_gen: v7x
topology: tpu7x:2x2x1
jax: 0.10.0
libtpu: 0.0.40
codegen_flags: <defaults>
</compile_context>

<pallas_src>
import functools

import jax
import jax.numpy as jnp
from jax.experimental import pallas as pl
from jax.experimental.pallas import tpu as pltpu

_LANE = 128      # lane width of a vreg
_SUBLANE = 8     # sublane count of a vreg


def _round_up(n, m):
    return ((n + m - 1) // m) * m


def _memory_net_seq_kernel(
    x_ref,      # [Bp, I]    current time step (T axis squeezed)
    h0_ref,     # [Bp, Hp]   initial hidden state (zero-padded lanes)
    w_gx_ref,   # [I,  Gp]   fused gates (ig|mw|og), x rows          Gp = 128
    w_gh_ref,   # [H,  Gp]   fused gates, hidden rows (K unpadded)
    b_g_ref,    # [1,  Gp]   fused gate bias (f32)
    w_out_ref,  # [H,  Op]   output weights (K unpadded)
    b_out_ref,  # [1,  Op]   output bias (f32)
    out_ref,    # [Bp, Op]   per-step output (T axis squeezed)
    hid_ref,    # [Bp, Hp]   hidden state; VMEM-resident carry across the grid
):
    t = pl.program_id(0)
    h = w_gh_ref.shape[0]          # true (unpadded) hidden size
    wdt = w_gx_ref.dtype           # weight storage dtype (f32 or bf16)

    # Initialize the carry once; padded lanes (>= h) are zero and never touched
    # again, so the carry stays mathematically inert.
    @pl.when(t == 0)
    def _():
        hid_ref[...] = h0_ref[...]

    x = x_ref[...]                 # [Bp, I]  f32
    h_prev = hid_ref[:, :h]        # [Bp, H]  f32 (carried in f32 between steps)

    # Single fused, lane-dense gate pre-activation; the concat of (x, h) never
    # materializes — it is two dots on weight slices, accumulated in f32.
    gates = (
        jnp.dot(x.astype(wdt), w_gx_ref[...], preferred_element_type=jnp.float32)
        + jnp.dot(h_prev.astype(wdt), w_gh_ref[...], preferred_element_type=jnp.float32)
        + b_g_ref[...]
    )                              # [Bp, Gp] f32

    # Static sub-vreg slices of the single 128-lane gate tile.
    input_gate = jax.nn.sigmoid(gates[:, 0 * h:1 * h])
    memory_write = jnp.tanh(gates[:, 1 * h:2 * h])
    output_gate = jax.nn.sigmoid(gates[:, 2 * h:3 * h])

    memory_cell = input_gate * memory_write
    new_hidden = output_gate * jnp.tanh(memory_cell)          # [Bp, H] f32

    out_ref[...] = (
        jnp.dot(new_hidden.astype(wdt), w_out_ref[...],
                preferred_element_type=jnp.float32)
        + b_out_ref[...]
    ).astype(out_ref.dtype)

    # Update the carry (padded lanes remain zero from the t==0 init).
    hid_ref[:, :h] = new_hidden.astype(hid_ref.dtype)


def init_params(key, input_size, hidden_size, output_size, dtype=jnp.float32):
    """PyTorch-Linear-style init (uniform +/-1/sqrt(fan_in)).

    Weights stored as [in_features, out_features] so y = x @ W + b.
    """
    def linear(k, fan_in, fan_out):
        kw, kb = jax.random.split(k)
        bound = 1.0 / jnp.sqrt(fan_in)
        w = jax.random.uniform(kw, (fan_in, fan_out), dtype, -bound, bound)
        b = jax.random.uniform(kb, (1, fan_out), dtype, -bound, bound)
        return w, b

    k1, k2, k3, k4 = jax.random.split(key, 4)
    comb = input_size + hidden_size
    w_ig, b_ig = linear(k1, comb, hidden_size)
    w_mt, b_mt = linear(k2, comb, hidden_size)
    w_og, b_og = linear(k3, comb, hidden_size)
    w_out, b_out = linear(k4, hidden_size, output_size)
    return {
        "w_ig": w_ig, "b_ig": b_ig,
        "w_mt": w_mt, "b_mt": b_mt,
        "w_og": w_og, "b_og": b_og,
        "w_out": w_out, "b_out": b_out,
    }


def pack_params(params, weight_dtype=jnp.float32):
    """Fuse + lane-pad the weights ONCE, outside the kernel.

      w_gates_x [I, Gp]   gate order ig | mw | og, Gp = round_up(3H, 128)
      w_gates_h [H, Gp]   (contraction dim left unpadded)
      b_gates   [1, Gp]   f32
      w_out     [H, Op]   Op = round_up(O, 128), contraction dim unpadded
      b_out     [1, Op]   f32

    weight_dtype=jnp.bfloat16 halves weight DMA/VMEM on v6e/v7x; biases and all
    in-kernel accumulation stay f32.
    """
    w_ig, w_mt, w_og = params["w_ig"], params["w_mt"], params["w_og"]
    i_plus_h, h = w_ig.shape
    i = i_plus_h - h
    o = params["w_out"].shape[1]
    gp = _round_up(3 * h, _LANE)
    op = _round_up(o, _LANE)

    wx = jnp.concatenate([w_ig[:i], w_mt[:i], w_og[:i]], axis=1)     # [I, 3H]
    wh = jnp.concatenate([w_ig[i:], w_mt[i:], w_og[i:]], axis=1)     # [H, 3H]
    bg = jnp.concatenate(
        [params["b_ig"], params["b_mt"], params["b_og"]], axis=1)    # [1, 3H]

    return {
        "w_gates_x": jnp.pad(wx, ((0, 0), (0, gp - 3 * h))).astype(weight_dtype),
        "w_gates_h": jnp.pad(wh, ((0, 0), (0, gp - 3 * h))).astype(weight_dtype),
        "b_gates": jnp.pad(bg, ((0, 0), (0, gp - 3 * h))).astype(jnp.float32),
        "w_out": jnp.pad(params["w_out"], ((0, 0), (0, op - o))).astype(weight_dtype),
        "b_out": jnp.pad(params["b_out"], ((0, 0), (0, op - o))).astype(jnp.float32),
    }


def simple_memory_network_sequence(xs, packed, hidden_state=None, *,
                                   hidden_size, output_size):
    """Run T recurrence steps inside ONE pallas_call (grid over time).

    xs: [T, B, I] float32.  hidden_state: optional [B, H].
    Returns (outputs [T, B, O], final hidden_state [B, H]).
    """
    t_len, b, i = xs.shape
    h = hidden_size
    o = output_size
    hp = _round_up(h, _LANE)
    gp = packed["w_gates_x"].shape[1]
    op = packed["w_out"].shape[1]
    bp = _round_up(b, _SUBLANE)

    xs_p = jnp.pad(xs, ((0, 0), (0, bp - b), (0, 0)))
    if hidden_state is None:
        h0_p = jnp.zeros((bp, hp), dtype=xs.dtype)
    else:
        h0_p = jnp.pad(hidden_state.astype(xs.dtype), ((0, bp - b), (0, hp - h)))

    w_gx, w_gh = packed["w_gates_x"], packed["w_gates_h"]
    b_g, w_out, b_out = packed["b_gates"], packed["w_out"], packed["b_out"]

    w_itemsize = jnp.dtype(w_gx.dtype).itemsize
    flops = 2 * t_len * bp * (i * gp + h * gp + h * op)
    transcendentals = 4 * t_len * bp * h          # 2x sigmoid + 2x tanh per elem
    bytes_accessed = (
        4 * (t_len * bp * i + bp * hp            # x stream, h0
             + t_len * bp * op + bp * hp         # outputs, final hidden
             + gp + op)                          # biases (f32)
        + w_itemsize * (i * gp + h * gp + h * op)  # weights, loaded once
    )

    const2 = lambda ti: (0, 0)

    out_p, hid_p = pl.pallas_call(
        _memory_net_seq_kernel,
        grid=(t_len,),
        in_specs=[
            pl.BlockSpec((None, bp, i), lambda ti: (ti, 0, 0)),   # x[t]
            pl.BlockSpec((bp, hp), const2),                       # h0
            pl.BlockSpec(w_gx.shape, const2),                     # weights:
            pl.BlockSpec(w_gh.shape, const2),                     #   constant index
            pl.BlockSpec(b_g.shape, const2),                      #   => DMA'd once,
            pl.BlockSpec(w_out.shape, const2),                    #   VMEM-resident
            pl.BlockSpec(b_out.shape, const2),                    #   for all steps
        ],
        out_specs=(
            pl.BlockSpec((None, bp, op), lambda ti: (ti, 0, 0)),  # out[t]
            pl.BlockSpec((bp, hp), const2),                       # hidden carry
        ),
        out_shape=(
            jax.ShapeDtypeStruct((t_len, bp, op), xs.dtype),
            jax.ShapeDtypeStruct((bp, hp), xs.dtype),
        ),
        compiler_params=pltpu.CompilerParams(
            dimension_semantics=("arbitrary",)),
        cost_estimate=pl.CostEstimate(
            flops=flops,
            transcendentals=transcendentals,
            bytes_accessed=bytes_accessed,
        ),
    )(xs_p, h0_p, w_gx, w_gh, b_g, w_out, b_out)

    return out_p[:, :b, :o], hid_p[:b, :h]


def simple_memory_network(x, packed, hidden_state=None, *, hidden_size, output_size):
    """Single recurrence step matching SimpleMemoryNetwork.forward.

    x: [B, I].  Returns (output [B, O], hidden_state [B, H]).
    """
    out, hid = simple_memory_network_sequence(
        x[None], packed, hidden_state,
        hidden_size=hidden_size, output_size=output_size)
    return out[0], hid


# ----------------------------- pure-JAX references -----------------------------

def _reference(x, params, hidden_state=None):
    b = x.shape[0]
    h = params["w_ig"].shape[1]
    if hidden_state is None:
        hidden_state = jnp.zeros((b, h), dtype=x.dtype)
    combined = jnp.concatenate([x, hidden_state], axis=1)
    input_gate = jax.nn.sigmoid(combined @ params["w_ig"] + params["b_ig"])
    memory_write = jnp.tanh(combined @ params["w_mt"] + params["b_mt"])
    output_gate = jax.nn.sigmoid(combined @ params["w_og"] + params["b_og"])
    memory_cell = input_gate * memory_write
    hid = output_gate * jnp.tanh(memory_cell)
    out = hid @ params["w_out"] + params["b_out"]
    return out, hid


def _reference_sequence(xs, params, hidden_state=None):
    b = xs.shape[1]
    h = params["w_ig"].shape[1]
    h0 = (jnp.zeros((b, h), dtype=xs.dtype)
          if hidden_state is None else hidden_state)

    def step(carry, x):
        out, new_h = _reference(x, params, carry)
        return new_h, out

    h_fin, outs = jax.lax.scan(step, h0, xs)
    return outs, h_fin


if __name__ == "__main__":
    INPUT_SIZE, HIDDEN_SIZE, OUTPUT_SIZE = 16, 32, 8
    BATCH, SEQ_LEN = 4, 8

    key = jax.random.PRNGKey(0)
    k_params, k_x, k_xs = jax.random.split(key, 3)
    params = init_params(k_params, INPUT_SIZE, HIDDEN_SIZE, OUTPUT_SIZE)
    packed_f32 = pack_params(params)                                  # exact (v5e-friendly)
    packed_bf16 = pack_params(params, weight_dtype=jnp.bfloat16)      # half weight DMA (v6e/v7x)

    x = jax.random.normal(k_x, (BATCH, INPUT_SIZE), dtype=jnp.float32)
    xs = jax.random.normal(k_xs, (SEQ_LEN, BATCH, INPUT_SIZE), dtype=jnp.float32)

    step_fn = jax.jit(functools.partial(
        simple_memory_network, hidden_size=HIDDEN_SIZE, output_size=OUTPUT_SIZE))
    seq_fn = jax.jit(functools.partial(
        simple_memory_network_sequence, hidden_size=HIDDEN_SIZE, output_size=OUTPUT_SIZE))

    # --- single step, hidden_state=None (module-forward semantics) ---
    out, hid = step_fn(x, packed_f32)
    jax.block_until_ready((out, hid))
    ref_out, ref_hid = _reference(x, params)
    assert out.shape == (BATCH, OUTPUT_SIZE) and hid.shape == (BATCH, HIDDEN_SIZE)
    assert jnp.allclose(out, ref_out, atol=1e-5, rtol=1e-5)
    assert jnp.allclose(hid, ref_hid, atol=1e-5, rtol=1e-5)

    # --- single step, explicit hidden state ---
    out2, hid2 = step_fn(x, packed_f32, hid)
    jax.block_until_ready((out2, hid2))
    ref_out2, ref_hid2 = _reference(x, params, hidden_state=ref_hid)
    assert jnp.allclose(out2, ref_out2, atol=1e-5, rtol=1e-5)
    assert jnp.allclose(hid2, ref_hid2, atol=1e-5, rtol=1e-5)

    # --- full sequence: recurrence loop runs inside the kernel (grid=(T,)) ---
    outs, hid_T = seq_fn(xs, packed_f32)
    jax.block_until_ready((outs, hid_T))
    ref_outs, ref_hid_T = _reference_sequence(xs, params)
    assert outs.shape == (SEQ_LEN, BATCH, OUTPUT_SIZE)
    assert hid_T.shape == (BATCH, HIDDEN_SIZE)
    assert jnp.allclose(outs, ref_outs, atol=1e-4, rtol=1e-4)
    assert jnp.allclose(hid_T, ref_hid_T, atol=1e-4, rtol=1e-4)

    # --- bf16-weight variant (v6e/v7x): f32 activations/accumulation kept ---
    outs_b, hid_b = seq_fn(xs, packed_bf16)
    jax.block_until_ready((outs_b, hid_b))
    assert jnp.allclose(outs_b, ref_outs, atol=5e-2, rtol=5e-2)
    assert jnp.allclose(hid_b, ref_hid_T, atol=5e-2, rtol=5e-2)

    print("KERNEL_OK")
</pallas_src>

<mosaic_0001>
module attributes {stable_mosaic.version = 11 : i64} {
  func.func @_memory_net_seq_kernel(%arg0: i32, %arg1: memref<1x8x16xf32, #tpu.memory_space<vmem>>, %arg2: memref<8x128xf32, #tpu.memory_space<vmem>>, %arg3: memref<16x128xf32, #tpu.memory_space<vmem>>, %arg4: memref<32x128xf32, #tpu.memory_space<vmem>>, %arg5: memref<1x128xf32, #tpu.memory_space<vmem>>, %arg6: memref<32x128xf32, #tpu.memory_space<vmem>>, %arg7: memref<1x128xf32, #tpu.memory_space<vmem>>, %arg8: memref<1x8x128xf32, #tpu.memory_space<vmem>>, %arg9: memref<8x128xf32, #tpu.memory_space<vmem>>) attributes {dimension_semantics = [#tpu.dimension_semantics<arbitrary>], iteration_bounds = array<i64: 1>, scalar_prefetch = 0 : i64, scratch_operands = 0 : i64, tpu.core_type = #tpu.core_type<tc>, window_params = [{transform_indices = @transform_0, window_bounds = array<i64: 1, 8, 16>}, {pipeline_mode = #tpu.pipeline_mode<synchronous>, transform_indices = @transform_1, window_bounds = array<i64: 8, 128>}, {pipeline_mode = #tpu.pipeline_mode<synchronous>, transform_indices = @transform_2, window_bounds = array<i64: 16, 128>}, {pipeline_mode = #tpu.pipeline_mode<synchronous>, transform_indices = @transform_3, window_bounds = array<i64: 32, 128>}, {pipeline_mode = #tpu.pipeline_mode<synchronous>, transform_indices = @transform_4, window_bounds = array<i64: 1, 128>}, {pipeline_mode = #tpu.pipeline_mode<synchronous>, transform_indices = @transform_5, window_bounds = array<i64: 32, 128>}, {pipeline_mode = #tpu.pipeline_mode<synchronous>, transform_indices = @transform_6, window_bounds = array<i64: 1, 128>}, {transform_indices = @transform_7, window_bounds = array<i64: 1, 8, 128>}, {pipeline_mode = #tpu.pipeline_mode<synchronous>, transform_indices = @transform_8, window_bounds = array<i64: 8, 128>}]} {
    %c0_i32 = arith.constant 0 : i32
    %0 = arith.cmpi eq, %arg0, %c0_i32 : i32
    %1 = arith.extui %0 : i1 to i32
    %c0_i32_0 = arith.constant 0 : i32
    %2 = arith.cmpi ne, %1, %c0_i32_0 : i32
    scf.if %2 {
      %c0_24 = arith.constant 0 : index
      %c0_25 = arith.constant 0 : index
      %40 = vector.load %arg2[%c0_24, %c0_25] : memref<8x128xf32, #tpu.memory_space<vmem>>, vector<8x128xf32>
      %c0_26 = arith.constant 0 : index
      %c0_27 = arith.constant 0 : index
      %41 = vector.load %arg9[%c0_26, %c0_27] : memref<8x128xf32, #tpu.memory_space<vmem>>, vector<8x128xf32>
      tpu.vector_store %arg9[%c0_26, %c0_27], %40 {strides = array<i32>} : memref<8x128xf32, #tpu.memory_space<vmem>>, vector<8x128xf32>,
    } else {
    }
    %c0 = arith.constant 0 : index
    %c0_1 = arith.constant 0 : index
    %c0_2 = arith.constant 0 : index
    %3 = vector.load %arg1[%c0, %c0_1, %c0_2] : memref<1x8x16xf32, #tpu.memory_space<vmem>>, vector<1x8x16xf32>
    %4 = vector.shape_cast %3 : vector<1x8x16xf32> to vector<8x16xf32>
    %c0_3 = arith.constant 0 : index
    %c0_4 = arith.constant 0 : index
    %5 = vector.load %arg9[%c0_3, %c0_4] : memref<8x128xf32, #tpu.memory_space<vmem>>, vector<8x32xf32>
    %c0_5 = arith.constant 0 : index
    %c0_6 = arith.constant 0 : index
    %6 = vector.load %arg3[%c0_5, %c0_6] : memref<16x128xf32, #tpu.memory_space<vmem>>, vector<16x128xf32>
    %cst = arith.constant dense<0.000000e+00> : vector<8x128xf32>
    %7 = tpu.matmul %4, %6, %cst {dimension_numbers = #tpu.dot_dimension_numbers<[1], [0], [0], [1], [0, 0, 1, 1], [], []>} : vector<8x16xf32>, vector<16x128xf32>, vector<8x128xf32> -> vector<8x128xf32>
    %c0_7 = arith.constant 0 : index
    %c0_8 = arith.constant 0 : index
    %8 = vector.load %arg4[%c0_7, %c0_8] : memref<32x128xf32, #tpu.memory_space<vmem>>, vector<32x128xf32>
    %cst_9 = arith.constant dense<0.000000e+00> : vector<8x128xf32>
    %9 = tpu.matmul %5, %8, %cst_9 {dimension_numbers = #tpu.dot_dimension_numbers<[1], [0], [0], [1], [0, 0, 1, 1], [], []>} : vector<8x32xf32>, vector<32x128xf32>, vector<8x128xf32> -> vector<8x128xf32>
    %10 = arith.addf %7, %9 : vector<8x128xf32>
    %c0_10 = arith.constant 0 : index
    %c0_11 = arith.constant 0 : index
    %11 = vector.load %arg5[%c0_10, %c0_11] : memref<1x128xf32, #tpu.memory_space<vmem>>, vector<1x128xf32>
    %12 = vector.broadcast %11 : vector<1x128xf32> to vector<8x128xf32>
    %13 = arith.addf %10, %12 : vector<8x128xf32>
    %14 = vector.extract_strided_slice %13 {offsets = [0, 0], sizes = [8, 32], strides = [1, 1]} : vector<8x128xf32> to vector<8x32xf32>
    %15 = arith.negf %14 : vector<8x32xf32>
    %16 = math.exp %15 : vector<8x32xf32>
    %cst_12 = arith.constant 1.000000e+00 : f32
    %17 = vector.broadcast %cst_12 : f32 to vector<8x32xf32>
    %18 = arith.addf %17, %16 : vector<8x32xf32>
    %19 = arith.divf %17, %18 : vector<8x32xf32>
    %20 = vector.extract_strided_slice %13 {offsets = [0, 32], sizes = [8, 32], strides = [1, 1]} : vector<8x128xf32> to vector<8x32xf32>
    %21 = math.tanh %20 : vector<8x32xf32>
    %22 = vector.extract_strided_slice %13 {offsets = [0, 64], sizes = [8, 32], strides = [1, 1]} : vector<8x128xf32> to vector<8x32xf32>
    %23 = arith.negf %22 : vector<8x32xf32>
    %24 = math.exp %23 : vector<8x32xf32>
    %cst_13 = arith.constant 1.000000e+00 : f32
    %25 = vector.broadcast %cst_13 : f32 to vector<8x32xf32>
    %26 = arith.addf %25, %24 : vector<8x32xf32>
    %27 = arith.divf %25, %26 : vector<8x32xf32>
    %28 = arith.mulf %19, %21 : vector<8x32xf32>
    %29 = math.tanh %28 : vector<8x32xf32>
    %30 = arith.mulf %27, %29 : vector<8x32xf32>
    %c0_14 = arith.constant 0 : index
    %c0_15 = arith.constant 0 : index
    %31 = vector.load %arg6[%c0_14, %c0_15] : memref<32x128xf32, #tpu.memory_space<vmem>>, vector<32x128xf32>
    %cst_16 = arith.constant dense<0.000000e+00> : vector<8x128xf32>
    %32 = tpu.matmul %30, %31, %cst_16 {dimension_numbers = #tpu.dot_dimension_numbers<[1], [0], [0], [1], [0, 0, 1, 1], [], []>} : vector<8x32xf32>, vector<32x128xf32>, vector<8x128xf32> -> vector<8x128xf32>
    %c0_17 = arith.constant 0 : index
    %c0_18 = arith.constant 0 : index
    %33 = vector.load %arg7[%c0_17, %c0_18] : memref<1x128xf32, #tpu.memory_space<vmem>>, vector<1x128xf32>
    %34 = vector.broadcast %33 : vector<1x128xf32> to vector<8x128xf32>
    %35 = arith.addf %32, %34 : vector<8x128xf32>
    %c0_19 = arith.constant 0 : index
    %c0_20 = arith.constant 0 : index
    %c0_21 = arith.constant 0 : index
    %36 = vector.load %arg8[%c0_19, %c0_20, %c0_21] : memref<1x8x128xf32, #tpu.memory_space<vmem>>, vector<1x8x128xf32>
    %37 = vector.shape_cast %36 : vector<1x8x128xf32> to vector<8x128xf32>
    %38 = vector.shape_cast %35 : vector<8x128xf32> to vector<1x8x128xf32>
    tpu.vector_store %arg8[%c0_19, %c0_20, %c0_21], %38 {strides = array<i32>} : memref<1x8x128xf32, #tpu.memory_space<vmem>>, vector<1x8x128xf32>,
    %c0_22 = arith.constant 0 : index
    %c0_23 = arith.constant 0 : index
    %39 = vector.load %arg9[%c0_22, %c0_23] : memref<8x128xf32, #tpu.memory_space<vmem>>, vector<8x32xf32>
    tpu.vector_store %arg9[%c0_22, %c0_23], %30 {strides = array<i32>} : memref<8x128xf32, #tpu.memory_space<vmem>>, vector<8x32xf32>,
    return
  }
  func.func @transform_0(%arg0: i32) -> (i32, i32, i32) {
    %c0_i32 = arith.constant 0 : i32
    %c0_i32_0 = arith.constant 0 : i32
    %c0_i32_1 = arith.constant 0 : i32
    return %arg0, %c0_i32, %c0_i32_0 : i32, i32, i32
  }
  func.func @transform_1(%arg0: i32) -> (i32, i32) {
    %c0_i32 = arith.constant 0 : i32
    %c0_i32_0 = arith.constant 0 : i32
    %c0_i32_1 = arith.constant 0 : i32
    return %c0_i32, %c0_i32_0 : i32, i32
  }
  func.func @transform_2(%arg0: i32) -> (i32, i32) {
    %c0_i32 = arith.constant 0 : i32
    %c0_i32_0 = arith.constant 0 : i32
    %c0_i32_1 = arith.constant 0 : i32
    return %c0_i32, %c0_i32_0 : i32, i32
  }
  func.func @transform_3(%arg0: i32) -> (i32, i32) {
    %c0_i32 = arith.constant 0 : i32
    %c0_i32_0 = arith.constant 0 : i32
    %c0_i32_1 = arith.constant 0 : i32
    return %c0_i32, %c0_i32_0 : i32, i32
  }
  func.func @transform_4(%arg0: i32) -> (i32, i32) {
    %c0_i32 = arith.constant 0 : i32
    %c0_i32_0 = arith.constant 0 : i32
    %c0_i32_1 = arith.constant 0 : i32
    return %c0_i32, %c0_i32_0 : i32, i32
  }
  func.func @transform_5(%arg0: i32) -> (i32, i32) {
    %c0_i32 = arith.constant 0 : i32
    %c0_i32_0 = arith.constant 0 : i32
    %c0_i32_1 = arith.constant 0 : i32
    return %c0_i32, %c0_i32_0 : i32, i32
  }
  func.func @transform_6(%arg0: i32) -> (i32, i32) {
    %c0_i32 = arith.constant 0 : i32
    %c0_i32_0 = arith.constant 0 : i32
    %c0_i32_1 = arith.constant 0 : i32
    return %c0_i32, %c0_i32_0 : i32, i32
  }
  func.func @transform_7(%arg0: i32) -> (i32, i32, i32) {
    %c0_i32 = arith.constant 0 : i32
    %c0_i32_0 = arith.constant 0 : i32
    %c0_i32_1 = arith.constant 0 : i32
    return %arg0, %c0_i32, %c0_i32_0 : i32, i32, i32
  }
  func.func @transform_8(%arg0: i32) -> (i32, i32) {
    %c0_i32 = arith.constant 0 : i32
    %c0_i32_0 = arith.constant 0 : i32
    %c0_i32_1 = arith.constant 0 : i32
    return %c0_i32, %c0_i32_0 : i32, i32
  }
}

</mosaic_0001>

<bundles_post_ra>
// kernel: simple_memory_network.1
= control target key start
LH: loop header
LB: loop body
LE: loop exit
PB: predicated region body
PF: predicated region fallthrough
CT: control target
= control target key end

     0   :  { %14 = vsyncpa [#allocation3], 0  ;;  %s588_s0 = inlined_call_operand.vmem [shape: f32[1,8,16], index: 0, kind: input, shape index: {}]   ;;  %s589_s1 = inlined_call_operand.vmem [shape: f32[8,128], index: 1, kind: input, shape index: {}]   ;;  %s590_s2 = inlined_call_operand.hbm [shape: f32[16,128], index: 2, kind: input, shape index: {}]   ;;  %s591_s3 = inlined_call_operand.vmem [shape: f32[32,128], index: 3, kind: input, shape index: {}]   ;;  %s592_s4 = inlined_call_operand.vmem [shape: f32[1,128], index: 4, kind: input, shape index: {}]   ;;  %s593_s5 = inlined_call_operand.hbm [shape: f32[32,128], index: 5, kind: input, shape index: {}]   ;;  %s594_s6 = inlined_call_operand.vmem [shape: f32[1,128], index: 6, kind: input, shape index: {}]   ;;  %s595_s7 = inlined_call_operand.vmem [shape: f32[1,8,128], index: 7, kind: output, shape index: {0}]   ;;  %s596_s8 = inlined_call_operand.vmem [shape: f32[8,128], index: 8, kind: output, shape index: {1}]  }
   0x1   :  { %15 = vsyncpa [#allocation5], 0  ;;  %s471_s27 = smov [#allocation2]   ;;  %s423_s9 = scalar_lea.hbm %s590_s2, 256 }
   0x2   :  { %s25_s28 = sshll.u32 %s471_s27, 4  ;;  %p424_p0 = scmp.ne.s32.totalorder %s590_s2, %s423_s9  ;;  %s26_s28 = int_to_ptr.vmem [resolvable:$true] %s25_s28 }
   0x3   :  { %p427_p1 = scmp.lt.u32.totalorder %s423_s9, %s590_s2 }
   0x5   :  { %p429_p2 = pnand %p427_p1, %p424_p0 }
   0x7   :  { %432 = shalt.err (!%p429_p2)
}
   0x8   :  { %s433_s14 = scalar_lea.vmem %s26_s28, 256  ;;  %p438_p4 = scmp.lt.s32.totalorder %s26_s28, %s26_s28 }
   0x9   :  { %p434_p3 = scmp.ne.s32.totalorder %s26_s28, %s433_s14  ;;  %p439_p5 = scmp.lt.s32.totalorder %s433_s14, %s433_s14 }
   0xb   :  { %p440_p6 = por %p439_p5, %p438_p4 }
   0xd   :  { %p441_p7 = pnand %p440_p6, %p434_p3 }
   0xf   :  { %444 = shalt.err (!%p441_p7)
}
  0x10   :  { %s472_s15 = smov 128   ;;  %s473_s16 = smov 8  }
  0x11   :  { %31 = dma.hbm_to_vmem [thread:$0]  %s590_s2, 256, %s26_s28, [#allocation3], %s472_s15, %s472_s15, %s473_s16  }
  0x12   :  { %s474_s19 = smov [#allocation4]   ;;  %s445_s23 = scalar_lea.hbm %s593_s5, 512 }
  0x13   :  { %s41_s20 = sshll.u32 %s474_s19, 4  ;;  %p446_p8 = scmp.ne.s32.totalorder %s593_s5, %s445_s23  ;;  %s42_s20 = int_to_ptr.vmem [resolvable:$true] %s41_s20 }
  0x14   :  { %p449_p9 = scmp.lt.u32.totalorder %s445_s23, %s593_s5 }
  0x16   :  { %p451_p10 = pnand %p449_p9, %p446_p8 }
  0x18   :  { %454 = shalt.err (!%p451_p10)
}
  0x19   :  { %s455_s29 = scalar_lea.vmem %s42_s20, 512  ;;  %p460_p12 = scmp.lt.s32.totalorder %s42_s20, %s42_s20 }
  0x1a   :  { %p456_p11 = scmp.ne.s32.totalorder %s42_s20, %s455_s29  ;;  %p461_p13 = scmp.lt.s32.totalorder %s455_s29, %s455_s29 }
  0x1c   :  { %p462_p0 = por %p461_p13, %p460_p12 }
  0x1e   :  { %p463_p1 = pnand %p462_p0, %p456_p11 }
  0x20   :  { %466 = shalt.err (!%p463_p1)
}
  0x21   :  { %47 = dma.hbm_to_vmem [thread:$0]  %s593_s5, 512, %s42_s20, [#allocation5], %s472_s15, %s472_s15, %s473_s16  }
  0x22   :  { %467 = dma.done.wait [#allocation3], 256  }
  0x23   :  { %468 = vsyncadd [#allocation3], 4294967040 }
  0x24   :  { %469 = dma.done.wait [#allocation5], 512  }
  0x25   :  { %470 = vsyncadd [#allocation5], 4294966784  ;;  %v475_v0 = vmov 0.0|0.0   ;;  %vm476_vm0 = vmmov 0   ;;  %v477_v1 = vmov 0.0   ;;  %v66_v2 = vld [vmem:[%s591_s3] sm:$0xff] }
  0x26   :  { %391 = vmatprep.subr.bf16.mxu0 %v475_v0  ;;  %397 = vmatprep.subr.bf16.mxu1 %v475_v0  ;;  %v67_v3 = vld [vmem:[%s591_s3 + $0x8] sm:$0xff]  ;;  %v64_v4 = vld [vmem:[#allocation2] sm:$0xff]  ;;  %v68_v7 = vld [vmem:[%s591_s3 + $0x10] sm:$0xff]  ;;  %vm144_vm1 = vcmask 130048   ;;  %vm70_vm2 = vcmask 261120  }
  0x27   :  { %377 = vmatprep.mubr.msk.f32.mxu1 %vm476_vm0, %v477_v1  ;;  %370 = vmatprep.mubr.msk.f32.mxu0 %vm476_vm0, %v477_v1  ;;  %v392_v5 = vpack.c.bf16 %v67_v3, %v66_v2  ;;  %v65_v6 = vld [vmem:[#allocation2 + $0x8] sm:$0xff]  ;;  %v69_v8 = vld [vmem:[%s591_s3 + $0x18] sm:$0xff]  ;;  %v60_v10 = vld [vmem:[%s589_s1] sm:$0xff] }
  0x28   :  { %v398_v9 = vpack.c.bf16 %v65_v6, %v64_v4  ;;  %v395_v11 = vpack.c.bf16 %v69_v8, %v68_v7  ;;  %61 = vst [vmem:[%s596_s8] sm:$0xff] %v60_v10  ;;  %v62_v12 = vld [vmem:[%s588_s0] sm:$0xff]  ;;  %s478_s0 = smov 96   ;;  %v244_v27 = vld [vmem:[#allocation4] sm:$0xff]  ;;  %v245_v28 = vld [vmem:[#allocation4 + $0x8] sm:$0xff] }
  0x29   :  { %393 = vmatpush3.bf16.msra.mxu0 %v392_v5  ;;  %v345_v16 = vld [vmem:[%s592_s4] ss:$0 sm:$0xff]  ;;  %v401_v30 = vpack.c.bf16 %v245_v28, %v244_v27  ;;  %v247_v31 = vld [vmem:[#allocation4 + $0x18] sm:$0xff]  ;;  %s479_s4 = smov 64  }
  0x2a   :  { %394 = vmatprep.subr.bf16.mxu0 %v475_v0  ;;  %399 = vmatpush3.bf16.msra.mxu1 %v398_v9  ;;  %v246_v29 = vld [vmem:[#allocation4 + $0x10] sm:$0xff] }
  0x2b   :  { %400 = vmatprep.subr.bf16.mxu1 %v475_v0  ;;  %v404_v32 = vpack.c.bf16 %v247_v31, %v246_v29  ;;  %v347_v37 = vld [vmem:[%s594_s6] ss:$0 sm:$0xff] }
  0x2d   :  { %396 = vmatpush3.bf16.msra.mxu0 %v395_v11  ;;  %378 = vmatmul.mubr.msk.f32.vlgmr.msra.gmra.mrb[0].mxu1 %vm144_vm1, %v62_v12 }
  0x2e   :  { %388 = vmatprep.mubr.msk.f32.mxu1 %vm476_vm0, %v477_v1  ;;  %402 = vmatpush3.bf16.msra.mxu1 %v401_v30 }
  0x2f   :  { %403 = vmatprep.subr.bf16.mxu1 %v475_v0 }
  0x30   :  { %371 = vmatmul.mubr.msk.f32.vlgmr.msra.gmra.mrb[0].mxu0 %vm70_vm2, %v60_v10 }
  0x32   :  { %405 = vmatpush3.bf16.msra.mxu1 %v404_v32 }
 0x100   :  { %v214_v13 = vpop.f32.mrb[0].mxu1 }
 0x101   :  { %v379_v14 = vpop.f32.mrb[1].mxu1 }
 0x103   :  { %v140_v15 = vpop.f32.mrb[0].mxu0 }
 0x104   :  { %v215_v17 = vadd.f32 %v214_v13, %v140_v15  ;;  %v372_v18 = vpop.f32.mrb[1].mxu0 }
 0x106   :  { %v225_v19 = vadd.f32 %v345_v16, %v215_v17 }
 0x108   :  { %415 = vtanh.f32 %v225_v19  ;;  %v346_v21 = vmul.f32 -1.442695, %v225_v19 }
 0x10a   :  { %417 = vpow2.f32 %v346_v21 }
 0x112   :  { %v416_v20 = vpop.eup %415 }
 0x113   :  { %234 = vrot.lane.b32.xlu0 %v416_v20, %s478_s0 }
 0x114   :  { %v418_v22 = vpop.eup %417 }
 0x115   :  { %v229_v23 = vadd.f32 1.0, %v418_v22 }
 0x117   :  { %419 = vrcp.f32 %v229_v23 }
 0x121   :  { %v420_v24 = vpop.eup %419 }
 0x185   :  { %v235_v25 = vpop.permute.xlu0 %234 }
 0x186   :  { %v237_v26 = vmul.f32 %v420_v24, %v235_v25 }
 0x188   :  { %421 = vtanh.f32 %v237_v26 }
 0x192   :  { %v422_v33 = vpop.eup %421 }
 0x193   :  { %240 = vrot.lane.b32.xlu0 %v422_v33, %s479_s4 }
 0x205   :  { %v241_v34 = vpop.permute.xlu0 %240 }
 0x206   :  { %v243_v35 = vmul.f32 %v420_v24, %v241_v34 }
 0x208   :  { %256 = vrot.lane.b32.xlu1 %v243_v35, %s479_s4 }
 0x27a   :  { %v257_v36 = vpop.permute.xlu1 %256 }
 0x27b   :  { %332 = vst.msk [vmem:[%s596_s8] sm:$0xff] %vm70_vm2, %v257_v36  ;;  %389 = vmatmul.mubr.msk.f32.vlgmr.msra.gmra.mrb[2].mxu1 %vm70_vm2, %v257_v36 }
 0x34e   :  { %v326_v38 = vpop.f32.mrb[2].mxu1 }
 0x34f   :  { %v327_v39 = vadd.f32 %v347_v37, %v326_v38  ;;  %v390_v40 = vpop.f32.mrb[3].mxu1 }
 0x351   :  { %330 = vst [vmem:[%s595_s7] sm:$0xff] %v327_v39 }
 0x352   :  { %341 = vsyncpa [#allocation3], 1 }
 0x353   :  { %342 = vsyncpa [#allocation5], 1 }

</bundles_post_ra>
